<compile_context>
chip_gen: v7x
topology: tpu7x:2x2x1
jax: 0.10.0
libtpu: 0.0.40
codegen_flags: <defaults>
</compile_context>

<pallas_src>
import math
import jax
import jax.numpy as jnp
from jax.experimental import pallas as pl
from jax.experimental.pallas import tpu as pltpu

LANES = 128
SUBLANES = 8
# 8192 rows x 128 lanes x 4 B = 4 MiB per f32 block (multiple of 8 sublanes).
TARGET_BLOCK_ROWS = 8192


def _temp_scale_kernel(temp_ref, x_ref, o_ref):
    # temp_ref: SMEM (1,) f32 holding the raw temperature parameter.
    # x_ref / o_ref: VMEM tiles of shape (block_rows, 128).
    scale = jnp.exp(temp_ref[0])                         # f32, EUP slot (free here)
    o_ref[...] = (x_ref[...] * scale).astype(o_ref.dtype)


def _run_kernel(x2d: jax.Array, temp_f32: jax.Array) -> jax.Array:
    rows, lanes = x2d.shape
    assert lanes == LANES

    if rows > TARGET_BLOCK_ROWS:
        block_rows = TARGET_BLOCK_ROWS
    elif rows >= 2 * SUBLANES:
        # Split medium inputs into >= 2 grid steps (rounded to a multiple of 8
        # sublanes) so both v7x TensorCores get work under "parallel" semantics.
        half = -(-rows // 2)
        block_rows = ((half + SUBLANES - 1) // SUBLANES) * SUBLANES
    else:
        block_rows = rows  # full-extent block (allowed even if < 8 rows)

    grid = (pl.cdiv(rows, block_rows),)

    return pl.pallas_call(
        _temp_scale_kernel,
        out_shape=jax.ShapeDtypeStruct((rows, LANES), x2d.dtype),
        grid_spec=pltpu.PrefetchScalarGridSpec(
            num_scalar_prefetch=0,
            grid=grid,
            in_specs=[
                pl.BlockSpec(memory_space=pltpu.SMEM),                # temp (f32 scalar)
                pl.BlockSpec((block_rows, LANES), lambda i: (i, 0)),  # x tile
            ],
            out_specs=pl.BlockSpec((block_rows, LANES), lambda i: (i, 0)),
        ),
        compiler_params=pltpu.CompilerParams(
            dimension_semantics=("parallel",),   # shard grid steps across TCs (v7x)
            vmem_limit_bytes=48 * 1024 * 1024,   # 4 MiB blocks x 2 bufs x (in+out) + scratch
        ),
    )(temp_f32, x2d)


def temperature_scale(x: jax.Array, temp: jax.Array) -> jax.Array:
    """Computes x * exp(temp), matching torch's TemperatureScale.forward.

    x: any-shape float array (e.g. NCHW); temp: shape (1,) float32 parameter.
    Output dtype matches x's dtype; the multiply itself is done in float32.
    """
    orig_shape = x.shape
    orig_dtype = x.dtype
    temp_f32 = temp.reshape(-1).astype(jnp.float32)

    flat = x.reshape(-1)
    n = flat.shape[0]
    n_bulk = (n // LANES) * LANES

    if n_bulk == 0:
        # Fewer than 128 elements: not worth a kernel launch.
        return (flat.astype(jnp.float32) * jnp.exp(temp_f32)[0]).astype(orig_dtype).reshape(orig_shape)

    rows = n_bulk // LANES

    if n_bulk == n:
        # Common case: pure (free) reshapes, no padding, no extra HBM passes.
        out2d = _run_kernel(flat.reshape(rows, LANES), temp_f32)
        return out2d.reshape(orig_shape)

    # Ragged case: bulk goes through the kernel on an unpadded lane-dense view;
    # only the <= 127-element tail is handled with plain jnp.
    bulk = flat[:n_bulk].reshape(rows, LANES)
    out_bulk = _run_kernel(bulk, temp_f32)
    tail = (flat[n_bulk:].astype(jnp.float32) * jnp.exp(temp_f32)[0]).astype(orig_dtype)
    out_flat = jnp.concatenate([out_bulk.reshape(-1), tail])
    return out_flat.reshape(orig_shape)


if __name__ == "__main__":
    # Deterministic parameter init, identical to the torch module's __init__:
    # temp = log(1 / start_val), start_val = 1.0
    start_val = 1.0
    temp = jnp.full((1,), math.log(1.0 / start_val), dtype=jnp.float32)

    key = jax.random.PRNGKey(0)
    x = jax.random.normal(key, (2, 4, 16, 16), dtype=jnp.float32)  # NCHW

    out = temperature_scale(x, temp)
    out = jax.block_until_ready(out)

    # Reference check in plain JAX.
    ref = x * jnp.exp(temp)
    assert out.shape == x.shape and out.dtype == x.dtype
    assert jnp.allclose(out, ref, atol=1e-6, rtol=1e-6)

    print("KERNEL_OK")
</pallas_src>

<mosaic_0001>
module attributes {stable_mosaic.version = 11 : i64} {
  func.func @_temp_scale_kernel(%arg0: i32, %arg1: memref<1xf32, #tpu.memory_space<smem>>, %arg2: memref<8x128xf32, #tpu.memory_space<vmem>>, %arg3: memref<8x128xf32, #tpu.memory_space<vmem>>) attributes {dimension_semantics = [#tpu.dimension_semantics<parallel>], iteration_bounds = array<i64: 2>, scalar_prefetch = 0 : i64, scratch_operands = 0 : i64, tpu.core_type = #tpu.core_type<tc>, window_params = [{transform_indices = @transform_0, window_bounds = array<i64: 1>}, {transform_indices = @transform_1, window_bounds = array<i64: 8, 128>}, {transform_indices = @transform_2, window_bounds = array<i64: 8, 128>}]} {
    %c0 = arith.constant 0 : index
    %0 = memref.load %arg1[%c0] : memref<1xf32, #tpu.memory_space<smem>>
    %1 = math.exp %0 : f32
    %c0_0 = arith.constant 0 : index
    %c0_1 = arith.constant 0 : index
    %2 = vector.load %arg2[%c0_0, %c0_1] : memref<8x128xf32, #tpu.memory_space<vmem>>, vector<8x128xf32>
    %3 = vector.broadcast %1 : f32 to vector<8x128xf32>
    %4 = arith.mulf %2, %3 : vector<8x128xf32>
    %c0_2 = arith.constant 0 : index
    %c0_3 = arith.constant 0 : index
    %5 = vector.load %arg3[%c0_2, %c0_3] : memref<8x128xf32, #tpu.memory_space<vmem>>, vector<8x128xf32>
    tpu.vector_store %arg3[%c0_2, %c0_3], %4 {strides = array<i32>} : memref<8x128xf32, #tpu.memory_space<vmem>>, vector<8x128xf32>,
    return
  }
  func.func @transform_0(%arg0: i32) -> i32 {
    %c0_i32 = arith.constant 0 : i32
    %c0_i32_0 = arith.constant 0 : i32
    return %c0_i32 : i32
  }
  func.func @transform_1(%arg0: i32) -> (i32, i32) {
    %c0_i32 = arith.constant 0 : i32
    %c0_i32_0 = arith.constant 0 : i32
    return %arg0, %c0_i32 : i32, i32
  }
  func.func @transform_2(%arg0: i32) -> (i32, i32) {
    %c0_i32 = arith.constant 0 : i32
    %c0_i32_0 = arith.constant 0 : i32
    return %arg0, %c0_i32 : i32, i32
  }
}

</mosaic_0001>

<bundles_post_ra>
// kernel: tpu_custom_call.1
= control target key start
LH: loop header
LB: loop body
LE: loop exit
PB: predicated region body
PF: predicated region fallthrough
CT: control target
= control target key end

     0   :  { %s594_s0 = inlined_call_operand.<no memory space> [shape: f32[1], index: 0, kind: input, shape index: {}]   ;;  %s595_s1 = inlined_call_operand.hbm [shape: f32[16,128], index: 1, kind: input, shape index: {}]   ;;  %s596_s2 = inlined_call_operand.hbm [shape: f32[16,128], index: 2, kind: output, shape index: {}]  }
   0x1   :  { %7 = sst [smem:[#allocation2]] %s594_s0 }
   0x2   :  { %8 = vsyncpa [#allocation4], 0 }
   0x3   :  { %10 = vsyncpa [#allocation4 + $0x1], 0 }
   0x4   :  { %11 = vsyncpa [#allocation5], 0 }
   0x5   :  { %13 = vsyncpa [#allocation5 + $0x1], 0  ;;  %s433_s11 = smov 0   ;;  %s435_s12 = smov 0  }
   0x6   :  { %s437_s13 = smov 0   ;;  %s439_s14 = smov 0  }
   0x7 LB: > { %s454_s0 = sadd.s32 4294967295, %s411_s14   ;;  %s253_s15 = sadd.s32 4294967294, %s411_s14   ;;  %s411_s14 = sphi %s439_s14, %s611_s14   ;;  %s407_s13 = sphi %s437_s13, %s610_s13   ;;  %s403_s12 = sphi %s435_s12, %s609_s12   ;;  %s399_s11 = sphi %s433_s11, %s608_s11  }
   0x8   : > { %s458_s16 = sadd.s32 1, %s411_s14   ;;  %s47_s17 = sadd.s32 1, %s407_s13 }
   0x9   : > { %s44_s18 = ssub.s32 %s411_s14, %s458_s16  ;;  %p54_p0 = scmp.ne.s32.totalorder %s407_s13, %s403_s12 }
   0xa   : > { %p45_p1 = scmp.eq.s32.totalorder %s44_s18, 0  ;;  %p55_p2 = scmp.eq.s32.totalorder %s411_s14, 0 }
   0xb   : > { %p60_p3 = scmp.ne.s32.totalorder %s403_s12, %s399_s11  ;;  %p61_p4 = scmp.eq.s32.totalorder %s454_s0, 0 }
   0xc   : > { %s470_s19 = scalar_select %p45_p1, %s407_s13, %s47_s17  }
   0xd   : > { %p472_p5 = por %p55_p2, %p54_p0  ;;  %p476_p6 = por %p61_p4, %p60_p3 }
   0xe   : > { %p84_p7 = scmp.eq.s32.totalorder %s454_s0, 1  ;;  %p90_p8 = scmp.eq.s32.totalorder %s253_s15, 1 }
   0xf   : > { %p279_p10 = scmp.lt.s32.totalorder %s411_s14, 2  ;;  %s113_s24 = sand.u32 1, %s407_s13  }
  0x10   : > { %p483_p11 = por %p84_p7, %p54_p0  ;;  %p487_p12 = por %p90_p8, %p60_p3 }
  0x11   : > { %s257_s25 = sshll.u32 %s411_s14, 7  ;;  %s256_s26 = sshll.u32 %s113_s24, 3 }
  0x12   : > { %s600_s22 = scalar_select %p483_p11, 1, 0 }
  0x13   : > { %s601_s23 = scalar_select %p487_p12, 1, 0 }
  0x14   : > { %s496_s29 = scalar_lea.hbm %s595_s1, %s257_s25  ;;  %s117_s30 = scalar_lea.vmem [#allocation3], %s256_s26 }
  0x15   : > { %s124_s3 = sshll.u32 %s117_s30, 4  ;;  %p500_p13 = pnand %p279_p10, %p472_p5  ;;  %s504_s3 = int_to_ptr.vmem [resolvable:$true] %s124_s3 }
  0x16   : > { %s114_s5 = scalar_lea.sflag [#allocation4], %s113_s24  ;;  %s315_s6 = scalar_lea.hbm %s496_s29, 128 }
  0x17   : > { %p316_p2 = scmp.ne.s32.totalorder %s496_s29, %s315_s6  ;;  %p317_p3 = pneg %p500_p13 }
  0x18   : > { %s320_s9 = scalar_lea.hbm %s595_s1, 256  ;;  %p321_p5 = scmp.lt.u32.totalorder %s496_s29, %s595_s1 }
  0x19   : > { %p318_p4 = pnand %p317_p3, %p316_p2  ;;  %p322_p8 = scmp.lt.u32.totalorder %s320_s9, %s315_s6 }
  0x1a   : > { %p324_p9 = scmp.lt.u32.totalorder %s315_s6, %s496_s29 }
  0x1b   : > { %p319_p7 = pneg %p318_p4  ;;  %p323_p10 = por %p322_p8, %p321_p5 }
  0x1d   : > { %p325_p0 = por %p324_p9, %p323_p10 }
  0x1f   : > { %p326_p1 = pnand %p325_p0, %p319_p7 }
  0x21   : > { %329 = shalt.err (!%p326_p1)
}
  0x22   : > { %s330_s17 = scalar_lea.vmem %s504_s3, 128  ;;  %s413_s18 = smov [#allocation3]  }
  0x23   : > { %p331_p2 = scmp.ne.s32.totalorder %s504_s3, %s330_s17  ;;  %s335_s20 = sshll.u32 %s413_s18, 4  ;;  %s336_s20 = int_to_ptr.vmem [resolvable:$false] %s335_s20 }
  0x24   : > { %s337_s24 = scalar_lea.vmem %s336_s20, 256  ;;  %p338_p11 = scmp.lt.s32.totalorder %s504_s3, %s336_s20 }
  0x25   : > { %p333_p4 = pnand %p331_p2, %p317_p3  ;;  %p339_p5 = scmp.lt.s32.totalorder %s337_s24, %s330_s17 }
  0x27   : > { %p334_p12 = pneg %p333_p4  ;;  %p340_p8 = por %p339_p5, %p338_p11 }
  0x29   : > { %p341_p9 = pnand %p340_p8, %p334_p12 }
  0x2b   : > { %344 = shalt.err (!%p341_p9)
}
  0x2c   : > { %274 = dma.hbm_to_vmem [thread:$0]  (!%p500_p13), %s496_s29, 128, %s504_s3, %s114_s5  }
  0x2d   : > { %p603_p0 = scmp.lt.s32.totalorder %s411_s14, 3  ;;  %p604_p1 = scmp.ge.s32.totalorder %s411_s14, 1 }
  0x2f   : > { %p130_p3 = pnand %p604_p1, %p603_p0 }
  0x30   : > { %s538_s25 = sand.u32 (!%p130_p3), 1, %s403_s12  }
  0x31   : > { %133 = sbr.rel (%p130_p3) target bundleno = 144 (0x90), region = 28  ;;  %s259_s26 = sshll.u32 (!%p130_p3), %s538_s25, 3 }
  0x32   : > { %s136_s27 = scalar_lea.sflag (!%p130_p3), [#allocation4], %s538_s25  ;;  %s139_s28 = scalar_lea.vmem (!%p130_p3), [#allocation3], %s259_s26 }
  0x38   : > { %390 = dma.done.wait (%p476_p6), %s136_s27, 128  }
  0x39   : > { %392 = vsyncadd (%p476_p6), %s136_s27, 4294967168  ;;  %s160_s29 = sld [smem:[#allocation2]]  ;;  %v165_v3 = vld [vmem:[%s139_s28] sm:$0xff]  ;;  %s262_s30 = sshll.u32 %s454_s0, 7 }
  0x3a   : > { %s159_s3 = scalar_lea.vmem [#allocation6], %s259_s26  ;;  %s550_s21 = scalar_lea.hbm %s596_s2, %s262_s30 }
  0x3b   : > { %s183_s4 = sshll.u32 %s159_s3, 4  ;;  %s170_s8 = scalar_lea.sflag [#allocation5], %s538_s25  ;;  %s552_s4 = int_to_ptr.vmem [resolvable:$true] %s183_s4 }
  0x3c   : > { %s345_s9 = scalar_lea.vmem %s552_s4, 128  ;;  %p605_p11 = scmp.ne.s32.totalorder %s600_s22, 0 }
  0x3d   : > { %p346_p6 = scmp.ne.s32.totalorder %s552_s4, %s345_s9  ;;  %s414_s0 = smov [#allocation6]  }
  0x3e   : > { %s349_s10 = sshll.u32 %s414_s0, 4  ;;  %s350_s10 = int_to_ptr.vmem [resolvable:$false] %s349_s10 }
  0x3f   : > { %v161_v0 = vstv %s160_s29  ;;  %p347_p12 = pnand %p346_p6, %p605_p11  ;;  %s351_s15 = scalar_lea.vmem %s350_s10, 256 }
  0x40   : > { %v162_v1 = vmul.f32 1.442695, %v161_v0  ;;  %p352_p7 = scmp.lt.s32.totalorder %s552_s4, %s350_s10  ;;  %p353_p10 = scmp.lt.s32.totalorder %s351_s15, %s345_s9 }
  0x41   : > { %p348_p13 = pneg %p347_p12 }
  0x42   : > { %313 = vpow2.f32 %v162_v1  ;;  %p354_p2 = por %p353_p10, %p352_p7 }
  0x44   : > { %p355_p4 = pnand %p354_p2, %p348_p13 }
  0x4c   : > { %v314_v2 = vpop.eup %313 }
  0x4d   : > { %265 = vpush %v314_v2 }
  0x7e   : > { %s266_s5 = spop %265 }
  0x7f   : > { %v166_v4 = vstv %s266_s5 }
  0x80   : > { %v167_v5 = vmul.f32 %v166_v4, %v165_v3 }
  0x82   : > { %168 = vst [vmem:[%s159_s3] sm:$0xff] %v167_v5 }
  0x83   : > { %358 = shalt.err (!%p355_p4)
}
  0x84   : > { %s359_s17 = scalar_lea.hbm %s550_s21, 128  ;;  %s363_s24 = scalar_lea.hbm %s596_s2, 256 }
  0x85   : > { %p360_p5 = scmp.ne.s32.totalorder %s550_s21, %s359_s17  ;;  %p364_p0 = scmp.lt.u32.totalorder %s550_s21, %s596_s2 }
  0x86   : > { %p365_p1 = scmp.lt.u32.totalorder %s363_s24, %s359_s17  ;;  %p367_p6 = scmp.lt.u32.totalorder %s359_s17, %s550_s21 }
  0x87   : > { %p361_p8 = pnand %p360_p5, %p605_p11 }
  0x88   : > { %p366_p3 = por %p365_p1, %p364_p0 }
  0x89   : > { %p362_p9 = pneg %p361_p8 }
  0x8a   : > { %p368_p12 = por %p367_p6, %p366_p3 }
  0x8c   : > { %p369_p13 = pnand %p368_p12, %p362_p9 }
  0x8e   : > { %372 = shalt.err (!%p369_p13)
}
  0x8f   : > { %269 = dma.vmem_to_hbm [thread:$0]  (%p605_p11), %s552_s4, 128, %s550_s21, %s170_s8  }
  0x90 PF: > { %s195_s27 = sand.u32 1, %s399_s11   ;;  %p606_p7 = scmp.ne.s32.totalorder %s601_s23, 0 }
  0x91   : > { %p607_p10 = scmp.ge.s32.totalorder %s411_s14, 2  ;;  %s196_s28 = scalar_lea.sflag [#allocation5], %s195_s27 }
  0x93   : > { %p276_p2 = pnand %p607_p10, %p606_p7 }
  0x95   : > { %394 = dma.done.wait (!%p276_p2), %s196_s28, 128  }
  0x96   : > { %396 = vsyncadd (!%p276_p2), %s196_s28, 4294967168  ;;  %p16_p4 = scmp.ge.s32.totalorder %s458_s16, 4   ;;  %s608_s11 = smov %s403_s12 }
  0x97   : > { %s609_s12 = smov %s407_s13  ;;  %s610_s13 = smov %s470_s19 }
  0x98   : > { %s611_s14 = smov %s458_s16  ;;  %18 = sbr.rel (!%p16_p4) target bundleno = 7 (0x7), region = 73 }
  0x9f   :  { %201 = vsyncpa [#allocation4], 1 }
  0xa0   :  { %203 = vsyncpa [#allocation4 + $0x1], 1 }
  0xa1   :  { %204 = vsyncpa [#allocation5], 1 }
  0xa2   :  { %206 = vsyncpa [#allocation5 + $0x1], 1 }

</bundles_post_ra>
